<compile_context>
chip_gen: v5e
topology: v5e:2x2
jax: 0.10.0
libtpu: 0.0.40
codegen_flags: <defaults>
</compile_context>

<pallas_src>
import jax
import jax.numpy as jnp
from jax import lax
from jax.experimental import pallas as pl
from jax.experimental.pallas import tpu as pltpu


_VMEM_LIMIT_BYTES = 32 * 1024 * 1024   # raise v5e's 16 MiB default; == v6e/v7x default
_LANE = 128


def _round_up(n, m):
    return ((n + m - 1) // m) * m


def _pick_row_tile(n_pad, desired=512):
    """Largest row tile <= desired dividing n_pad and leaving >= 2 row tiles
    (keeps both v7x TensorCores busy on the "parallel" axis)."""
    for c in (512, 256, 128):
        if c <= desired and n_pad % c == 0 and n_pad // c >= 2:
            return c
    return n_pad


def _pick_k_tile(n_pad, desired=2048):
    """Largest reduction tile <= desired dividing n_pad."""
    for c in (2048, 1024, 512, 256, 128):
        if c <= desired and n_pad % c == 0:
            return c
    return n_pad


# ---------------------------------------------------------------------------
# Kernel 1: d = rsqrt(rowsum(adj)) (0 for isolated nodes), optionally fused with
# the cast of adj to the matmul operand dtype (the cast rides the same HBM read
# the degree pass already performs, removing a separate XLA cast pass).
# Grid: (row tiles, column-reduction tiles).  The (tm, 1) d block is resident
# across the reduction axis and used directly as the accumulator.
# ---------------------------------------------------------------------------
def _degree_kernel(adj_ref, d_ref):
    k = pl.program_id(1)

    @pl.when(k == 0)
    def _():
        d_ref[...] = jnp.zeros_like(d_ref)

    d_ref[...] += jnp.sum(adj_ref[...], axis=1, keepdims=True)

    @pl.when(k == pl.num_programs(1) - 1)
    def _():
        deg = d_ref[...]
        # Matches the torch inf -> 0 fixup for deg == 0 (0/1 adjacency).
        d_ref[...] = jnp.where(deg > 0.0, lax.rsqrt(deg), 0.0)


def _degree_cast_kernel(adj_ref, d_ref, adj_out_ref):
    k = pl.program_id(1)

    @pl.when(k == 0)
    def _():
        d_ref[...] = jnp.zeros_like(d_ref)

    tile = adj_ref[...]
    d_ref[...] += jnp.sum(tile, axis=1, keepdims=True)
    adj_out_ref[...] = tile.astype(adj_out_ref.dtype)   # cast fused into this pass

    @pl.when(k == pl.num_programs(1) - 1)
    def _():
        deg = d_ref[...]
        d_ref[...] = jnp.where(deg > 0.0, lax.rsqrt(deg), 0.0)


def _degree_and_cast(adj_f32, operand_dtype, *, tm, tk):
    n = adj_f32.shape[0]
    grid = (n // tm, n // tk)
    params = pltpu.CompilerParams(
        dimension_semantics=("parallel", "arbitrary"),
        vmem_limit_bytes=_VMEM_LIMIT_BYTES)

    if jnp.dtype(operand_dtype) == jnp.dtype(jnp.float32):
        # Exact path: no cast copy; the big matmul streams the f32 adjacency itself.
        d = pl.pallas_call(
            _degree_kernel,
            out_shape=jax.ShapeDtypeStruct((n, 1), jnp.float32),
            grid_spec=pltpu.PrefetchScalarGridSpec(
                num_scalar_prefetch=0,
                grid=grid,
                in_specs=[pl.BlockSpec((tm, tk), lambda i, k: (i, k))],
                out_specs=pl.BlockSpec((tm, 1), lambda i, k: (i, 0)),
            ),
            compiler_params=params,
        )(adj_f32)
        return d, adj_f32

    d, adj_op = pl.pallas_call(
        _degree_cast_kernel,
        out_shape=(jax.ShapeDtypeStruct((n, 1), jnp.float32),
                   jax.ShapeDtypeStruct((n, n), operand_dtype)),
        grid_spec=pltpu.PrefetchScalarGridSpec(
            num_scalar_prefetch=0,
            grid=grid,
            in_specs=[pl.BlockSpec((tm, tk), lambda i, k: (i, k))],
            out_specs=(pl.BlockSpec((tm, 1), lambda i, k: (i, 0)),
                       pl.BlockSpec((tm, tk), lambda i, k: (i, k))),
        ),
        compiler_params=params,
    )(adj_f32)
    return d, adj_op


# ---------------------------------------------------------------------------
# Kernel 2: y = d[:, None] * (x @ W_padded), stored in the matmul operand dtype.
# F_in and F_out_padded are small, so a single row-tiled grid suffices.
# ---------------------------------------------------------------------------
def _xw_kernel(x_ref, w_ref, d_ref, y_ref):
    xw = jnp.dot(x_ref[...], w_ref[...], preferred_element_type=jnp.float32)
    y_ref[...] = (d_ref[...] * xw).astype(y_ref.dtype)


def _scaled_xw(x_f32, w_pad, d, operand_dtype, *, tm):
    n, f_in = x_f32.shape
    fp = w_pad.shape[1]
    grid = (n // tm,)
    return pl.pallas_call(
        _xw_kernel,
        out_shape=jax.ShapeDtypeStruct((n, fp), operand_dtype),
        grid_spec=pltpu.PrefetchScalarGridSpec(
            num_scalar_prefetch=0,
            grid=grid,
            in_specs=[
                pl.BlockSpec((tm, f_in), lambda i: (i, 0)),
                pl.BlockSpec((f_in, fp), lambda i: (0, 0)),
                pl.BlockSpec((tm, 1), lambda i: (i, 0)),
            ],
            out_specs=pl.BlockSpec((tm, fp), lambda i: (i, 0)),
        ),
        compiler_params=pltpu.CompilerParams(
            dimension_semantics=("parallel",),
            vmem_limit_bytes=_VMEM_LIMIT_BYTES),
    )(x_f32, w_pad, d)


# ---------------------------------------------------------------------------
# Kernel 3: out = d[:, None] * (adj @ y) + b
# Grid: (row tiles, k-reduction tiles).  The f32 output block is resident across
# the k axis and doubles as the accumulator; init / finalize gated with pl.when.
# ---------------------------------------------------------------------------
def _gcn_matmul_kernel(adj_ref, y_ref, d_ref, b_ref, o_ref):
    k = pl.program_id(1)

    @pl.when(k == 0)
    def _():
        o_ref[...] = jnp.zeros_like(o_ref)

    o_ref[...] += jnp.dot(adj_ref[...], y_ref[...],
                          preferred_element_type=jnp.float32)

    @pl.when(k == pl.num_programs(1) - 1)
    def _():
        o_ref[...] = d_ref[...] * o_ref[...] + b_ref[...]


def _gcn_matmul(adj_op, y_op, d, b_pad, *, tm, tk):
    n = adj_op.shape[0]
    fp = y_op.shape[1]
    grid = (n // tm, n // tk)
    return pl.pallas_call(
        _gcn_matmul_kernel,
        out_shape=jax.ShapeDtypeStruct((n, fp), jnp.float32),
        grid_spec=pltpu.PrefetchScalarGridSpec(
            num_scalar_prefetch=0,
            grid=grid,
            in_specs=[
                pl.BlockSpec((tm, tk), lambda i, k: (i, k)),   # adj tile (LHS)
                pl.BlockSpec((tk, fp), lambda i, k: (k, 0)),   # y tile (RHS)
                pl.BlockSpec((tm, 1), lambda i, k: (i, 0)),    # row scale d
                pl.BlockSpec((1, fp), lambda i, k: (0, 0)),    # bias
            ],
            out_specs=pl.BlockSpec((tm, fp), lambda i, k: (i, 0)),
        ),
        compiler_params=pltpu.CompilerParams(
            dimension_semantics=("parallel", "arbitrary"),
            vmem_limit_bytes=_VMEM_LIMIT_BYTES),
    )(adj_op, y_op, d, b_pad)


# ---------------------------------------------------------------------------
# Wrappers: GCNLayer.forward(adj, x) with parameters (weight, bias).
# gcn_normalize_adjacency() can be called once and its result reused across the
# layers of a deep GCN that share the same adjacency.
# ---------------------------------------------------------------------------
def gcn_normalize_adjacency(adj, *, operand_dtype=jnp.bfloat16, tm=512, tk=2048):
    """One streaming pass over adj: pad, compute d = rsqrt(rowsum(adj)) (0 for
    isolated nodes), and (for narrow operand dtypes) emit the operand-dtype copy
    of the adjacency.  Returns (adj_op, d, n_original)."""
    n = adj.shape[0]
    assert adj.shape == (n, n)

    # Pad N (only if needed) to a small fixed multiple; tiles are then chosen as
    # divisors of n_pad, so no lcm(tm, tk) blow-up and no extra remat for aligned N.
    n_pad = _round_up(n, 512) if n >= 1024 else _round_up(n, 128)
    adj_f32 = adj.astype(jnp.float32)
    if n_pad != n:
        # Padded rows/cols have deg == 0 -> d == 0 and contribute nothing.
        adj_f32 = jnp.pad(adj_f32, ((0, n_pad - n), (0, n_pad - n)))

    tm = _pick_row_tile(n_pad, tm)
    tk = _pick_k_tile(n_pad, tk)
    d, adj_op = _degree_and_cast(adj_f32, operand_dtype, tm=tm, tk=tk)
    return adj_op, d, n


def gcn_layer_apply(adj_prep, x, weight, bias, *, tm=512, tk=2048):
    adj_op, d, n = adj_prep
    n_pad = adj_op.shape[0]
    f_in, f_out = weight.shape
    assert x.shape == (n, f_in)

    tm = _pick_row_tile(n_pad, tm)
    tk = _pick_k_tile(n_pad, tk)

    # Lane-dense padded feature dimension (unmasked vst output stores).
    fp = _round_up(f_out, _LANE)
    w_pad = jnp.pad(weight.astype(jnp.float32), ((0, 0), (0, fp - f_out)))
    b_pad = jnp.pad(bias.astype(jnp.float32).reshape(1, f_out),
                    ((0, 0), (0, fp - f_out)))

    x_f32 = x.astype(jnp.float32)
    if n_pad != n:
        x_f32 = jnp.pad(x_f32, ((0, n_pad - n), (0, 0)))

    # y = d * (x @ W) in the matmul operand dtype (bf16 by default, f32 for exact).
    y = _scaled_xw(x_f32, w_pad, d, adj_op.dtype, tm=tm)          # (n_pad, fp)

    # out = d * (adj @ y) + b with the N^2 adjacency streamed in large tiles.
    out_pad = _gcn_matmul(adj_op, y, d, b_pad, tm=tm, tk=tk)      # (n_pad, fp) f32

    return out_pad[:n, :f_out]


def gcn_layer(adj, x, weight, bias, *, operand_dtype=jnp.bfloat16,
              tm=512, tk=2048):
    prep = gcn_normalize_adjacency(adj, operand_dtype=operand_dtype, tm=tm, tk=tk)
    return gcn_layer_apply(prep, x, weight, bias, tm=tm, tk=tk)


def reference(adj, x, weight, bias):
    deg = jnp.sum(adj, axis=1)
    d = deg ** -0.5
    d = jnp.where(jnp.isinf(d), 0.0, d)
    adj_norm = adj * d[:, None] * d[None, :]
    return adj_norm @ x @ weight + bias


if __name__ == "__main__":
    N, F_IN, F_OUT = 256, 32, 16

    key = jax.random.PRNGKey(0)
    k_adj, k_x, k_w, k_b = jax.random.split(key, 4)

    # Random 0/1 adjacency with one isolated node (all-zero row) to exercise the
    # deg == 0 -> d == 0 path.
    adj = (jax.random.uniform(k_adj, (N, N)) > 0.5).astype(jnp.float32)
    adj = adj.at[0, :].set(0.0)

    x = jax.random.normal(k_x, (N, F_IN), dtype=jnp.float32)

    # Xavier-uniform weight (as in reset_parameters); small random bias to
    # exercise the bias-add path.
    bound = (6.0 / (F_IN + F_OUT)) ** 0.5
    weight = jax.random.uniform(k_w, (F_IN, F_OUT), minval=-bound, maxval=bound,
                                dtype=jnp.float32)
    bias = 0.1 * jax.random.normal(k_b, (F_OUT,), dtype=jnp.float32)

    ref = reference(adj, x, weight, bias)

    # Exact (f32 operand) path.
    out_f32 = jax.block_until_ready(
        gcn_layer(adj, x, weight, bias, operand_dtype=jnp.float32))
    assert out_f32.shape == (N, F_OUT)
    assert jnp.allclose(out_f32, ref, atol=1e-4, rtol=1e-4)

    # Default bf16-operand path (f32 accumulation) -- halves the N^2 HBM stream.
    out_bf16 = jax.block_until_ready(gcn_layer(adj, x, weight, bias))
    assert out_bf16.shape == (N, F_OUT)
    assert jnp.allclose(out_bf16, ref, atol=3e-2, rtol=3e-2)

    # Cached-preprocessing path (reuse (adj_op, d) across layers of a deep GCN).
    prep = gcn_normalize_adjacency(adj)
    out_cached = jax.block_until_ready(gcn_layer_apply(prep, x, weight, bias))
    assert out_cached.shape == (N, F_OUT)
    assert jnp.allclose(out_cached, ref, atol=3e-2, rtol=3e-2)

    print("KERNEL_OK")
</pallas_src>

<mosaic_0001>
module attributes {stable_mosaic.version = 11 : i64} {
  func.func @_degree_kernel(%arg0: i32, %arg1: i32, %arg2: memref<128x256xf32, #tpu.memory_space<vmem>>, %arg3: memref<128x1xf32, #tpu.memory_space<vmem>>) attributes {dimension_semantics = [#tpu.dimension_semantics<parallel>, #tpu.dimension_semantics<arbitrary>], iteration_bounds = array<i64: 2, 1>, scalar_prefetch = 0 : i64, scratch_operands = 0 : i64, tpu.core_type = #tpu.core_type<tc>, window_params = [{transform_indices = @transform_0, window_bounds = array<i64: 128, 256>}, {transform_indices = @transform_1, window_bounds = array<i64: 128, 1>}]} {
    %c0_i32 = arith.constant 0 : i32
    %0 = arith.cmpi eq, %arg1, %c0_i32 : i32
    %1 = arith.extui %0 : i1 to i32
    %c0_i32_0 = arith.constant 0 : i32
    %2 = arith.cmpi ne, %1, %c0_i32_0 : i32
    scf.if %2 {
      %cst_8 = arith.constant 0.000000e+00 : f32
      %12 = vector.broadcast %cst_8 : f32 to vector<128x1xf32>
      %c0_9 = arith.constant 0 : index
      %c0_10 = arith.constant 0 : index
      %13 = vector.load %arg3[%c0_9, %c0_10] : memref<128x1xf32, #tpu.memory_space<vmem>>, vector<128x1xf32>
      tpu.vector_store %arg3[%c0_9, %c0_10], %12 {strides = array<i32>} : memref<128x1xf32, #tpu.memory_space<vmem>>, vector<128x1xf32>,
    } else {
    }
    %c0 = arith.constant 0 : index
    %c0_1 = arith.constant 0 : index
    %3 = vector.load %arg3[%c0, %c0_1] : memref<128x1xf32, #tpu.memory_space<vmem>>, vector<128x1xf32>
    %c0_2 = arith.constant 0 : index
    %c0_3 = arith.constant 0 : index
    %4 = vector.load %arg2[%c0_2, %c0_3] : memref<128x256xf32, #tpu.memory_space<vmem>>, vector<128x256xf32>
    %cst = arith.constant dense<0.000000e+00> : vector<128xf32>
    %5 = vector.multi_reduction <add>, %4, %cst [1] : vector<128x256xf32> to vector<128xf32>
    %6 = vector.shape_cast %5 : vector<128xf32> to vector<128x1xf32>
    %7 = arith.addf %3, %6 : vector<128x1xf32>
    %c0_4 = arith.constant 0 : index
    %c0_5 = arith.constant 0 : index
    %8 = vector.load %arg3[%c0_4, %c0_5] : memref<128x1xf32, #tpu.memory_space<vmem>>, vector<128x1xf32>
    tpu.vector_store %arg3[%c0_4, %c0_5], %7 {strides = array<i32>} : memref<128x1xf32, #tpu.memory_space<vmem>>, vector<128x1xf32>,
    %c0_i32_6 = arith.constant 0 : i32
    %9 = arith.cmpi eq, %arg1, %c0_i32_6 : i32
    %10 = arith.extui %9 : i1 to i32
    %c0_i32_7 = arith.constant 0 : i32
    %11 = arith.cmpi ne, %10, %c0_i32_7 : i32
    scf.if %11 {
      %c0_8 = arith.constant 0 : index
      %c0_9 = arith.constant 0 : index
      %12 = vector.load %arg3[%c0_8, %c0_9] : memref<128x1xf32, #tpu.memory_space<vmem>>, vector<128x1xf32>
      %cst_10 = arith.constant 0.000000e+00 : f32
      %13 = vector.broadcast %cst_10 : f32 to vector<128x1xf32>
      %14 = arith.cmpf ogt, %12, %13 : vector<128x1xf32>
      %15 = math.rsqrt %12 : vector<128x1xf32>
      %cst_11 = arith.constant 0.000000e+00 : f32
      %16 = vector.broadcast %cst_11 : f32 to vector<128x1xf32>
      %17 = arith.select %14, %15, %16 : vector<128x1xi1>, vector<128x1xf32>
      %c0_12 = arith.constant 0 : index
      %c0_13 = arith.constant 0 : index
      %18 = vector.load %arg3[%c0_12, %c0_13] : memref<128x1xf32, #tpu.memory_space<vmem>>, vector<128x1xf32>
      tpu.vector_store %arg3[%c0_12, %c0_13], %17 {strides = array<i32>} : memref<128x1xf32, #tpu.memory_space<vmem>>, vector<128x1xf32>,
    } else {
    }
    return
  }
  func.func @transform_0(%arg0: i32, %arg1: i32) -> (i32, i32) {
    %c0_i32 = arith.constant 0 : i32
    return %arg0, %arg1 : i32, i32
  }
  func.func @transform_1(%arg0: i32, %arg1: i32) -> (i32, i32) {
    %c0_i32 = arith.constant 0 : i32
    %c0_i32_0 = arith.constant 0 : i32
    return %arg0, %c0_i32 : i32, i32
  }
}

</mosaic_0001>

<bundles_post_ra>
// kernel: tpu_custom_call.1
= control target key start
LH: loop header
LB: loop body
LE: loop exit
PB: predicated region body
PF: predicated region fallthrough
CT: control target
= control target key end

     0   :  { %6 = vsyncpa [#allocation3], 0  ;;  %s1249_s0 = inlined_call_operand.hbm [shape: f32[256,256], index: 0, kind: input, shape index: {}]   ;;  %s1250_s1 = inlined_call_operand.vmem [shape: f32[256,1], index: 1, kind: output, shape index: {}]  }
   0x1   :  { %8 = vsyncpa [#allocation3 + $0x1], 0  ;;  %s816_s6 = smov 0   ;;  %s818_s7 = smov 0  }
   0x2   :  { %s820_s8 = smov 0   ;;  %s822_s9 = smov 0  }
   0x3   :  { %s824_s10 = smov 0   ;;  %s826_s11 = smov 0  }
   0x4 LB: > { %s615_s12 = sadd.s32 4294967295, %s801_s11   ;;  %s26_s13 = sadd.s32 1, %s797_s10  ;;  %s801_s11 = sphi %s826_s11, %s14_s11   ;;  %s797_s10 = sphi %s824_s10, %s1259_s10   ;;  %s793_s9 = sphi %s822_s9, %s1258_s9   ;;  %s789_s8 = sphi %s820_s8, %s1257_s8   ;;  %s785_s7 = sphi %s818_s7, %s1256_s7   ;;  %s781_s6 = sphi %s816_s6, %s1255_s6  }
   0x5   : > { %p28_p0 = scmp.ge.s32.totalorder %s26_s13, 2  ;;  %s35_s14 = sadd.s32 1, %s789_s8 }
   0x6   : > { %p42_p1 = scmp.ne.s32.totalorder %s789_s8, %s785_s7  ;;  %p43_p2 = scmp.eq.s32.totalorder %s801_s11, 0 }
   0x7   : > { %s1261_s13 = smov (%p28_p0, %s26_s13), 0  ;;  %p48_p4 = scmp.ne.s32.totalorder %s785_s7, %s781_s6 }
   0x8   : > { %p852_p3 = por %p43_p2, %p42_p1  ;;  %s30_s16 = ssub.s32 %s797_s10, %s1261_s13 }
   0x9   : > { %p49_p5 = scmp.eq.s32.totalorder %s615_s12, 0  ;;  %p33_p6 = scmp.eq.s32.totalorder %s30_s16, 0 }
   0xa   : > { %p637_p8 = scmp.lt.s32.totalorder %s801_s11, 2  ;;  %s98_s19 = sand.u32 1, %s789_s8  }
   0xb   : > { %p859_p7 = por %p49_p5, %p48_p4  ;;  %s630_s20 = sshll.u32 %s797_s10, 8 }
   0xc   : > { %s865_s18 = scalar_select %p33_p6, %s789_s8, %s35_s14  }
   0xd   : > { %s619_s21 = sshll.u32 %s98_s19, 8  ;;  %s110_s24 = scalar_lea.hbm %s1249_s0, %s630_s20 }
   0xe   : > { %s111_s25 = sshll.u32 %s110_s24, 4  ;;  %s102_s26 = scalar_lea.vmem [#allocation2], %s619_s21  ;;  %s112_s25 = int_to_ptr.hbm [resolvable:$true] %s111_s25 }
   0xf   : > { %s113_s27 = sshll.u32 %s102_s26, 4  ;;  %p634_p9 = pnand %p637_p8, %p852_p3  ;;  %s114_s27 = int_to_ptr.vmem [resolvable:$true] %s113_s27 }
  0x10   : > { %p623_p10 = scmp.ge.s32.totalorder %s801_s11, 1  ;;  %p121_p11 = scmp.lt.s32.totalorder %s801_s11, 3 }
  0x11   : > { %s99_s28 = scalar_lea.sflag [#allocation3], %s98_s19  ;;  %s803_s29 = smov 256  }
  0x12   : > { %s804_s30 = smov 16   ;;  %p122_p12 = pnand %p623_p10, %p121_p11 }
  0x13   : > { %636 = dma.hbm_to_vmem [thread:$0]  (!%p634_p9), %s112_s25, 4096, %s114_s27, %s99_s28, %s803_s29, %s803_s29, %s804_s30  }
  0x14   : > { %125 = sbr.rel (%p122_p12) target bundleno = 217 (0xd9), region = 24  ;;  %s127_s2 = sand.u32 (!%p122_p12), 1, %s785_s7  }
  0x15   : > { %s624_s3 = sshll.u32 (!%p122_p12), %s127_s2, 8  ;;  %s128_s4 = scalar_lea.sflag (!%p122_p12), [#allocation3], %s127_s2 }
  0x16   : > { %s877_s5 = scalar_lea.vmem (!%p122_p12), [#allocation2], %s624_s3 }
  0x19   : > { %776 = dma.done.wait (%p859_p7), %s128_s4, 4096  }
  0x1a   : > { %778 = vsyncadd (%p859_p7), %s128_s4, 4294963200  ;;  %s625_s6 = sshll.u32 %s793_s9, 4  ;;  %v204_v0 = vld [vmem:[%s877_s5 + $0x40] sm:$0xff]  ;;  %v205_v1 = vld [vmem:[%s877_s5 + $0x48] sm:$0xff]  ;;  %vm163_vm0 = vcmask 7168   ;;  %v805_v24 = vmov 0.0  }
  0x1b   : > { %p154_p13 = scmp.lt.s32.totalorder %s625_s6, 31  ;;  %v200_v2 = vld [vmem:[%s877_s5 + $0x20] sm:$0xff]  ;;  %v240_v3 = vadd.f32 %v205_v1, %v204_v0  ;;  %v201_v4 = vld [vmem:[%s877_s5 + $0x28] sm:$0xff]  ;;  %v206_v9 = vld [vmem:[%s877_s5 + $0x50] sm:$0xff] }
  0x1c   : > { %v196_v5 = vld [vmem:[%s877_s5] sm:$0xff]  ;;  %v197_v6 = vld [vmem:[%s877_s5 + $0x8] sm:$0xff]  ;;  %v234_v7 = vadd.f32 %v201_v4, %v200_v2  ;;  %v207_v10 = vld [vmem:[%s877_s5 + $0x58] sm:$0xff] }
  0x1d   : > { %v228_v8 = vadd.f32 %v197_v6, %v196_v5  ;;  %241 = vadd.xlane.f32.xlu2 %v240_v3  ;;  %s1263_s6 = smov (!%p154_p13, %s625_s6), 31  ;;  %v202_v11 = vld [vmem:[%s877_s5 + $0x30] sm:$0xff]  ;;  %v203_v12 = vld [vmem:[%s877_s5 + $0x38] sm:$0xff]  ;;  %v243_v15 = vadd.f32 %v207_v10, %v206_v9  ;;  %v212_v18 = vld [vmem:[%s877_s5 + $0x80] sm:$0xff] }
  0x1e   : > { %235 = vadd.xlane.f32.xlu1 %v234_v7  ;;  %v198_v13 = vld [vmem:[%s877_s5 + $0x10] sm:$0xff]  ;;  %v199_v14 = vld [vmem:[%s877_s5 + $0x18] sm:$0xff]  ;;  %s626_s9 = sshll.u32 %s1263_s6, 3  ;;  %v237_v16 = vadd.f32 %v203_v12, %v202_v11  ;;  %v213_v19 = vld [vmem:[%s877_s5 + $0x88] sm:$0xff] }
  0x1f   : > { %229 = vadd.xlane.f32.xlu0 %v228_v8  ;;  %v231_v17 = vadd.f32 %v199_v14, %v198_v13  ;;  %s899_s15 = scalar_lea.vmem %s1250_s1, %s626_s9  ;;  %v210_v20 = vld [vmem:[%s877_s5 + $0x70] sm:$0xff]  ;;  %v211_v21 = vld [vmem:[%s877_s5 + $0x78] sm:$0xff]  ;;  %v208_v22 = vld [vmem:[%s877_s5 + $0x60] sm:$0xff]  ;;  %v252_v25 = vadd.f32 %v213_v19, %v212_v18 }
  0x20   : > { %v209_v23 = vld [vmem:[%s877_s5 + $0x68] sm:$0xff]  ;;  %168 = vst.msk [vmem:[%s899_s15 + $0x20] sm:$0xff] %vm163_vm0, %v805_v24  ;;  %v249_v26 = vadd.f32 %v211_v21, %v210_v20  ;;  %v218_v28 = vld [vmem:[%s877_s5 + $0xb0] sm:$0xff]  ;;  %v219_v29 = vld [vmem:[%s877_s5 + $0xb8] sm:$0xff] }
  0x21   : > { %164 = vst.msk [vmem:[%s899_s15] sm:$0xff] %vm163_vm0, %v805_v24  ;;  %v246_v27 = vadd.f32 %v209_v23, %v208_v22  ;;  %v216_v30 = vld [vmem:[%s877_s5 + $0xa0] sm:$0xff]  ;;  %v217_v31 = vld [vmem:[%s877_s5 + $0xa8] sm:$0xff]  ;;  %v214_v32 = vld [vmem:[%s877_s5 + $0x90] sm:$0xff]  ;;  %v261_v34 = vadd.f32 %v219_v29, %v218_v28 }
  0x22   : > { %165 = vst.msk [vmem:[%s899_s15 + $0x8] sm:$0xff] %vm163_vm0, %v805_v24  ;;  %v215_v33 = vld [vmem:[%s877_s5 + $0x98] sm:$0xff]  ;;  %v258_v35 = vadd.f32 %v217_v31, %v216_v30  ;;  %v224_v37 = vld [vmem:[%s877_s5 + $0xe0] sm:$0xff]  ;;  %v225_v38 = vld [vmem:[%s877_s5 + $0xe8] sm:$0xff] }
  0x23   : > { %166 = vst.msk [vmem:[%s899_s15 + $0x10] sm:$0xff] %vm163_vm0, %v805_v24  ;;  %v255_v36 = vadd.f32 %v215_v33, %v214_v32  ;;  %v222_v39 = vld [vmem:[%s877_s5 + $0xd0] sm:$0xff]  ;;  %v223_v40 = vld [vmem:[%s877_s5 + $0xd8] sm:$0xff]  ;;  %v220_v41 = vld [vmem:[%s877_s5 + $0xc0] sm:$0xff]  ;;  %v270_v43 = vadd.f32 %v225_v38, %v224_v37 }
  0x24   : > { %167 = vst.msk [vmem:[%s899_s15 + $0x18] sm:$0xff] %vm163_vm0, %v805_v24  ;;  %v221_v42 = vld [vmem:[%s877_s5 + $0xc8] sm:$0xff]  ;;  %v267_v44 = vadd.f32 %v223_v40, %v222_v39  ;;  %v226_v46 = vld [vmem:[%s877_s5 + $0xf0] sm:$0xff]  ;;  %v227_v47 = vld [vmem:[%s877_s5 + $0xf8] sm:$0xff] }
  0x25   : > { %244 = vadd.xlane.f32.xlu2 %v243_v15  ;;  %169 = vst.msk [vmem:[%s899_s15 + $0x28] sm:$0xff] %vm163_vm0, %v805_v24  ;;  %v264_v45 = vadd.f32 %v221_v42, %v220_v41  ;;  %v273_v48 = vadd.f32 %v227_v47, %v226_v46 }
  0x26   : > { %238 = vadd.xlane.f32.xlu1 %v237_v16  ;;  %170 = vst.msk [vmem:[%s899_s15 + $0x30] sm:$0xff] %vm163_vm0, %v805_v24 }
  0x27   : > { %232 = vadd.xlane.f32.xlu0 %v231_v17  ;;  %171 = vst.msk [vmem:[%s899_s15 + $0x38] sm:$0xff] %vm163_vm0, %v805_v24  ;;  %v184_v49 = vld [vmem:[%s899_s15 + $0x20] sm:$0xff] }
  0x28   : > { %172 = vst.msk [vmem:[%s899_s15 + $0x40] sm:$0xff] %vm163_vm0, %v805_v24  ;;  %v180_v51 = vld [vmem:[%s899_s15] sm:$0xff] }
  0x29   : > { %173 = vst.msk [vmem:[%s899_s15 + $0x48] sm:$0xff] %vm163_vm0, %v805_v24  ;;  %v181_v60 = vld [vmem:[%s899_s15 + $0x8] sm:$0xff] }
  0x2a   : > { %174 = vst.msk [vmem:[%s899_s15 + $0x50] sm:$0xff] %vm163_vm0, %v805_v24  ;;  %v182_v50 = vld [vmem:[%s899_s15 + $0x10] sm:$0xff] }
  0x2b   : > { %175 = vst.msk [vmem:[%s899_s15 + $0x58] sm:$0xff] %vm163_vm0, %v805_v24  ;;  %v183_v59 = vld [vmem:[%s899_s15 + $0x18] sm:$0xff] }
  0x2c   : > { %176 = vst.msk [vmem:[%s899_s15 + $0x60] sm:$0xff] %vm163_vm0, %v805_v24  ;;  %v185_v58 = vld [vmem:[%s899_s15 + $0x28] sm:$0xff] }
  0x2d   : > { %253 = vadd.xlane.f32.xlu2 %v252_v25  ;;  %177 = vst.msk [vmem:[%s899_s15 + $0x68] sm:$0xff] %vm163_vm0, %v805_v24  ;;  %v186_v8 = vld [vmem:[%s899_s15 + $0x30] sm:$0xff] }
  0x2e   : > { %250 = vadd.xlane.f32.xlu1 %v249_v26  ;;  %178 = vst.msk [vmem:[%s899_s15 + $0x70] sm:$0xff] %vm163_vm0, %v805_v24  ;;  %v187_v7 = vld [vmem:[%s899_s15 + $0x38] sm:$0xff] }
  0x2f   : > { %247 = vadd.xlane.f32.xlu0 %v246_v27  ;;  %179 = vst.msk [vmem:[%s899_s15 + $0x78] sm:$0xff] %vm163_vm0, %v805_v24  ;;  %v188_v6 = vld [vmem:[%s899_s15 + $0x40] sm:$0xff] }
  0x32   : > { %v191_v28 = vld [vmem:[%s899_s15 + $0x58] sm:$0xff] }
  0x35   : > { %262 = vadd.xlane.f32.xlu2 %v261_v34 }
  0x36   : > { %259 = vadd.xlane.f32.xlu1 %v258_v35 }
  0x37   : > { %256 = vadd.xlane.f32.xlu0 %v255_v36 }
  0x3d   : > { %271 = vadd.xlane.f32.xlu2 %v270_v43 }
  0x3e   : > { %268 = vadd.xlane.f32.xlu1 %v267_v44 }
  0x3f   : > { %265 = vadd.xlane.f32.xlu0 %v264_v45 }
  0x47   : > { %274 = vadd.xlane.f32.xlu0 %v273_v48 }
  0x90   : > { %v242_v52 = vpop.xlane.xlu2 %241 }
  0x91   : > { %v280_v53 = vadd.f32 %v242_v52, %v184_v49  ;;  %v236_v54 = vpop.xlane.xlu1 %235 }
  0x92   : > { %v230_v55 = vpop.xlane.xlu0 %229  ;;  %v278_v56 = vadd.f32 %v236_v54, %v182_v50 }
  0x93   : > { %v276_v57 = vadd.f32 %v230_v55, %v180_v51  ;;  %297 = vst.msk [vmem:[%s899_s15 + $0x20] sm:$0xff] %vm163_vm0, %v280_v53 }
  0x94   : > { %295 = vst.msk [vmem:[%s899_s15 + $0x10] sm:$0xff] %vm163_vm0, %v278_v56 }
  0x95   : > { %293 = vst.msk [vmem:[%s899_s15] sm:$0xff] %vm163_vm0, %v276_v57 }
  0x98   : > { %v245_v61 = vpop.xlane.xlu2 %244 }
  0x99   : > { %v281_v62 = vadd.f32 %v245_v61, %v185_v58  ;;  %v239_v63 = vpop.xlane.xlu1 %238 }
  0x9a   : > { %v233_v0 = vpop.xlane.xlu0 %232  ;;  %v966_v1 = vld [vmem:[%s899_s15 + $0x20] sm:$0xff]  ;;  %v279_v2 = vadd.f32 %v239_v63, %v183_v59 }
  0x9b   : > { %v277_v3 = vadd.f32 %v233_v0, %v181_v60  ;;  %689 = vrsqrt.f32 %v966_v1  ;;  %v970_v4 = vld [vmem:[%s899_s15 + $0x10] sm:$0xff]  ;;  %298 = vst.msk [vmem:[%s899_s15 + $0x28] sm:$0xff] %vm163_vm0, %v281_v62  ;;  %vm332_vm1 = vcmp.gt.f32.partialorder %v966_v1, 0.0  ;;  %vm390_vm2 = vweird.f32 %v966_v1 }
  0x9c   : > { %691 = vrsqrt.f32 %v970_v4  ;;  %v976_v5 = vld [vmem:[%s899_s15] sm:$0xff]  ;;  %296 = vst.msk [vmem:[%s899_s15 + $0x18] sm:$0xff] %vm163_vm0, %v279_v2  ;;  %vm370_vm4 = vweird.f32 %v970_v4  ;;  %vm330_vm8 = vcmp.gt.f32.partialorder %v970_v4, 0.0  ;;  %v190_v0 = vld [vmem:[%s899_s15 + $0x50] sm:$0xff] }
  0x9d   : > { %693 = vrsqrt.f32 %v976_v5  ;;  %294 = vst.msk [vmem:[%s899_s15 + $0x8] sm:$0xff] %vm163_vm0, %v277_v3  ;;  %vm350_vm9 = vweird.f32 %v976_v5  ;;  %vm328_vm11 = vcmp.gt.f32.partialorder %v976_v5, 0.0 }
  0xa0   : > { %v254_v9 = vpop.xlane.xlu2 %253 }
  0xa1   : > { %v690_v10 = vpop.eup %689  ;;  %v284_v11 = vadd.f32 %v254_v9, %v188_v6  ;;  %v251_v12 = vpop.xlane.xlu1 %250 }
  0xa2   : > { %v248_v13 = vpop.xlane.xlu0 %247  ;;  %v692_v14 = vpop.eup %691  ;;  %v385_v15 = vmul.f32 %v690_v10, %v966_v1  ;;  %v988_v16 = vld [vmem:[%s899_s15 + $0x28] sm:$0xff]  ;;  %v283_v17 = vadd.f32 %v251_v12, %v187_v7  ;;  %vm391_vm3 = vweird.f32 %v690_v10 }
  0xa3   : > { %v282_v18 = vadd.f32 %v248_v13, %v186_v8  ;;  %v694_v19 = vpop.eup %693  ;;  %v365_v20 = vmul.f32 %v692_v14, %v970_v4  ;;  %695 = vrsqrt.f32 %v988_v16  ;;  %v993_v21 = vld [vmem:[%s899_s15 + $0x18] sm:$0xff]  ;;  %301 = vst.msk [vmem:[%s899_s15 + $0x40] sm:$0xff] %vm163_vm0, %v284_v11  ;;  %vm371_vm5 = vweird.f32 %v692_v14  ;;  %vm392_vm7 = vmor %vm390_vm2, %vm391_vm3  ;;  %v189_v7 = vld [vmem:[%s899_s15 + $0x48] sm:$0xff] }
  0xa4   : > { %v386_v22 = vmul.f32 %v690_v10, %v385_v15  ;;  %v345_v23 = vmul.f32 %v694_v19, %v976_v5  ;;  %v999_v24 = vld [vmem:[%s899_s15 + $0x8] sm:$0xff]  ;;  %300 = vst.msk [vmem:[%s899_s15 + $0x38] sm:$0xff] %vm163_vm0, %v283_v17  ;;  %697 = vrsqrt.f32 %v993_v21  ;;  %vm351_vm6 = vweird.f32 %v694_v19  ;;  %vm372_vm10 = vmor %vm370_vm4, %vm371_vm5  ;;  %v194_v13 = vld [vmem:[%s899_s15 + $0x70] sm:$0xff] }
  0xa5   : > { %v366_v25 = vmul.f32 %v692_v14, %v365_v20  ;;  %299 = vst.msk [vmem:[%s899_s15 + $0x30] sm:$0xff] %vm163_vm0, %v282_v18  ;;  %699 = vrsqrt.f32 %v999_v24  ;;  %vm352_vm12 = vmor %vm350_vm9, %vm351_vm6  ;;  %vm333_vm13 = vcmp.gt.f32.partialorder %v988_v16, 0.0  ;;  %vm400_vm14 = vweird.f32 %v988_v16 }
  0xa6   : > { %v387_v26 = vmul.f32 0.5, %v386_v22  ;;  %v346_v27 = vmul.f32 %v694_v19, %v345_v23  ;;  %vm380_vm2 = vweird.f32 %v993_v21  ;;  %vm329_vm5 = vcmp.gt.f32.partialorder %v999_v24, 0.0 }
  0xa7   : > { %v367_v29 = vmul.f32 0.5, %v366_v25  ;;  %v192_v25 = vld [vmem:[%s899_s15 + $0x60] sm:$0xff] }
  0xa8   : > { %v388_v30 = vsub.f32 1.5, %v387_v26  ;;  %v347_v31 = vmul.f32 0.5, %v346_v27  ;;  %v263_v32 = vpop.xlane.xlu2 %262 }
  0xa9   : > { %v1010_v33 = vpop.eup %695  ;;  %v368_v34 = vsub.f32 1.5, %v367_v29  ;;  %v287_v35 = vadd.f32 %v263_v32, %v191_v28  ;;  %v260_v43 = vpop.xlane.xlu1 %259 }
  0xaa   : > { %v1013_v36 = vpop.xlane.xlu0 %256  ;;  %v389_v37 = vmul.f32 %v690_v10, %v388_v30  ;;  %v348_v38 = vsub.f32 1.5, %v347_v31  ;;  %v395_v39 = vmul.f32 %v1010_v33, %v988_v16  ;;  %v1018_v40 = vld [vmem:[%s899_s15 + $0x40] sm:$0xff]  ;;  %v1020_v41 = vpop.eup %697  ;;  %vm401_vm15 = vweird.f32 %v1010_v33 }
  0xab   : > { %v369_v42 = vmul.f32 %v692_v14, %v368_v34  ;;  %701 = vrsqrt.f32 %v1018_v40  ;;  %304 = vst.msk [vmem:[%s899_s15 + $0x58] sm:$0xff] %vm163_vm0, %v287_v35  ;;  %v1030_v44 = vpop.eup %699  ;;  %v375_v48 = vmul.f32 %v1020_v41, %v993_v21  ;;  %v1045_v52 = vld [vmem:[%s899_s15 + $0x38] sm:$0xff]  ;;  %vm381_vm3 = vweird.f32 %v1020_v41  ;;  %vm402_vm4 = vmor %vm400_vm14, %vm401_vm15 }
  0xac   : > { %v393_v45 = vsel %vm392_vm7, %v690_v10, %v389_v37  ;;  %v349_v46 = vmul.f32 %v694_v19, %v348_v38  ;;  %v396_v47 = vmul.f32 %v1010_v33, %v395_v39  ;;  %v355_v51 = vmul.f32 %v1030_v44, %v999_v24  ;;  %v1053_v57 = vld [vmem:[%s899_s15 + $0x30] sm:$0xff]  ;;  %vm1095_vm7 = vmor %vm380_vm2, %vm381_vm3 }
  0xad   : > { %v508_v49 = vsel %vm332_vm1, %v393_v45, 0.0  ;;  %v373_v50 = vsel %vm372_vm10, %v692_v14, %v369_v42  ;;  %v376_v56 = vmul.f32 %v1020_v41, %v375_v48  ;;  %703 = vrsqrt.f32 %v1045_v52 }
  0xae   : > { %524 = vst.msk [vmem:[%s899_s15 + $0x20] sm:$0xff] %vm163_vm0, %v508_v49  ;;  %v506_v53 = vsel %vm330_vm8, %v373_v50, 0.0  ;;  %v353_v54 = vsel %vm352_vm12, %v694_v19, %v349_v46  ;;  %v397_v55 = vmul.f32 0.5, %v396_v47  ;;  %v356_v59 = vmul.f32 %v1030_v44, %v355_v51  ;;  %v193_v19 = vld [vmem:[%s899_s15 + $0x68] sm:$0xff] }
  0xaf   : > { %522 = vst.msk [vmem:[%s899_s15 + $0x10] sm:$0xff] %vm163_vm0, %v506_v53  ;;  %v504_v58 = vsel %vm328_vm11, %v353_v54, 0.0  ;;  %v377_v61 = vmul.f32 0.5, %v376_v56  ;;  %vm331_vm1 = vcmp.gt.f32.partialorder %v993_v21, 0.0  ;;  %705 = vrsqrt.f32 %v1053_v57  ;;  %v195_v21 = vld [vmem:[%s899_s15 + $0x78] sm:$0xff] }
  0xb0   : > { %520 = vst.msk [vmem:[%s899_s15] sm:$0xff] %vm163_vm0, %v504_v58  ;;  %v398_v60 = vsub.f32 1.5, %v397_v55  ;;  %v357_v63 = vmul.f32 0.5, %v356_v59  ;;  %vm361_vm6 = vweird.f32 %v1030_v44  ;;  %v286_v11 = vadd.f32 %v260_v43, %v190_v0  ;;  %v272_v12 = vpop.xlane.xlu2 %271 }
  0xb1   : > { %v1064_v62 = vpop.eup %701  ;;  %v378_v3 = vsub.f32 1.5, %v377_v61  ;;  %vm360_vm8 = vweird.f32 %v999_v24  ;;  %vm430_vm9 = vweird.f32 %v1018_v40  ;;  %v269_v18 = vpop.xlane.xlu1 %268  ;;  %v285_v23 = vadd.f32 %v1013_v36, %v189_v7 }
  0xb2   : > { %v266_v1 = vpop.xlane.xlu0 %265  ;;  %v399_v2 = vmul.f32 %v1010_v33, %v398_v60  ;;  %v425_v4 = vmul.f32 %v1064_v62, %v1018_v40  ;;  %v1075_v5 = vld [vmem:[%s899_s15 + $0x58] sm:$0xff]  ;;  %v358_v6 = vsub.f32 1.5, %v357_v63  ;;  %vm362_vm10 = vmor %vm360_vm8, %vm361_vm6  ;;  %vm431_vm11 = vweird.f32 %v1064_v62  ;;  %303 = vst.msk [vmem:[%s899_s15 + $0x50] sm:$0xff] %vm163_vm0, %v286_v11 }
  0xb3   : > { %707 = vrsqrt.f32 %v1075_v5  ;;  %v379_v9 = vmul.f32 %v1020_v41, %v378_v3  ;;  %v704_v16 = vpop.eup %703  ;;  %v290_v30 = vadd.f32 %v272_v12, %v194_v13  ;;  %v289_v34 = vadd.f32 %v269_v18, %v193_v19  ;;  %302 = vst.msk [vmem:[%s899_s15 + $0x48] sm:$0xff] %vm163_vm0, %v285_v23  ;;  %vm432_vm12 = vmor %vm430_vm9, %vm431_vm11 }
  0xb4   : > { %v403_v8 = vsel %vm402_vm4, %v1010_v33, %v399_v2  ;;  %v426_v10 = vmul.f32 %v1064_v62, %v425_v4  ;;  %v359_v17 = vmul.f32 %v1030_v44, %v358_v6  ;;  %v415_v29 = vmul.f32 %v704_v16, %v1045_v52 }
  0xb5   : > { %v509_v14 = vsel %vm333_vm13, %v403_v8, 0.0  ;;  %v383_v20 = vsel %vm1095_vm7, %v1020_v41, %v379_v9  ;;  %v706_v26 = vpop.eup %705  ;;  %v288_v37 = vadd.f32 %v266_v1, %v192_v25  ;;  %307 = vst.msk [vmem:[%s899_s15 + $0x70] sm:$0xff] %vm163_vm0, %v290_v30  ;;  %vm336_vm13 = vcmp.gt.f32.partialorder %v1018_v40, 0.0 }
  0xb6   : > { %525 = vst.msk [vmem:[%s899_s15 + $0x28] sm:$0xff] %vm163_vm0, %v509_v14  ;;  %v427_v22 = vmul.f32 0.5, %v426_v10  ;;  %v507_v27 = vsel %vm331_vm1, %v383_v20, 0.0  ;;  %v363_v28 = vsel %vm362_vm10, %v1030_v44, %v359_v17  ;;  %v405_v33 = vmul.f32 %v706_v26, %v1053_v57 }
  0xb7   : > { %523 = vst.msk [vmem:[%s899_s15 + $0x18] sm:$0xff] %vm163_vm0, %v507_v27  ;;  %v505_v31 = vsel %vm329_vm5, %v363_v28, 0.0  ;;  %v416_v36 = vmul.f32 %v704_v16, %v415_v29  ;;  %vm420_vm14 = vweird.f32 %v1045_v52  ;;  %vm421_vm15 = vweird.f32 %v704_v16 }
  0xb8   : > { %v428_v32 = vsub.f32 1.5, %v427_v22  ;;  %521 = vst.msk [vmem:[%s899_s15 + $0x8] sm:$0xff] %vm163_vm0, %v505_v31  ;;  %v406_v41 = vmul.f32 %v706_v26, %v405_v33  ;;  %vm411_vm1 = vweird.f32 %v706_v26  ;;  %vm410_vm2 = vweird.f32 %v1053_v57  ;;  %vm422_vm3 = vmor %vm420_vm14, %vm421_vm15 }
  0xb9   : > { %v708_v35 = vpop.eup %707  ;;  %v417_v42 = vmul.f32 0.5, %v416_v36  ;;  %306 = vst.msk [vmem:[%s899_s15 + $0x68] sm:$0xff] %vm163_vm0, %v289_v34  ;;  %v1147_v50 = vld [vmem:[%s899_s15 + $0x50] sm:$0xff]  ;;  %vm460_vm4 = vweird.f32 %v1075_v5  ;;  %vm335_vm6 = vcmp.gt.f32.partialorder %v1045_v52, 0.0  ;;  %vm412_vm7 = vmor %vm410_vm2, %vm411_vm1  ;;  %vm334_vm8 = vcmp.gt.f32.partialorder %v1053_v57, 0.0 }
  0xba   : > { %v275_v38 = vpop.xlane.xlu0 %274  ;;  %v429_v39 = vmul.f32 %v1064_v62, %v428_v32  ;;  %v455_v24 = vmul.f32 %v708_v35, %v1075_v5  ;;  %v407_v45 = vmul.f32 0.5, %v406_v41  ;;  %305 = vst.msk [vmem:[%s899_s15 + $0x60] sm:$0xff] %vm163_vm0, %v288_v37  ;;  %709 = vrsqrt.f32 %v1147_v50  ;;  %v1156_v56 = vld [vmem:[%s899_s15 + $0x48] sm:$0xff] }
  0xbb   : > { %v291_v43 = vadd.f32 %v275_v38, %v195_v21  ;;  %v418_v48 = vsub.f32 1.5, %v417_v42  ;;  %vm461_vm5 = vweird.f32 %v708_v35  ;;  %711 = vrsqrt.f32 %v1156_v56 }
  0xbc   : > { %v433_v44 = vsel %vm432_vm12, %v1064_v62, %v429_v39  ;;  %v456_v46 = vmul.f32 %v708_v35, %v455_v24  ;;  %v408_v49 = vsub.f32 1.5, %v407_v45  ;;  %v1160_v61 = vld [vmem:[%s899_s15 + $0x70] sm:$0xff]  ;;  %vm462_vm9 = vmor %vm460_vm4, %vm461_vm5  ;;  %vm339_vm10 = vcmp.gt.f32.partialorder %v1075_v5, 0.0 }
  0xbd   : > { %v512_v47 = vsel %vm336_vm13, %v433_v44, 0.0  ;;  %v419_v51 = vmul.f32 %v704_v16, %v418_v48  ;;  %308 = vst.msk [vmem:[%s899_s15 + $0x78] sm:$0xff] %vm163_vm0, %v291_v43  ;;  %713 = vrsqrt.f32 %v1160_v61  ;;  %vm338_vm11 = vcmp.gt.f32.partialorder %v1147_v50, 0.0 }
  0xbe   : > { %528 = vst.msk [vmem:[%s899_s15 + $0x40] sm:$0xff] %vm163_vm0, %v512_v47  ;;  %v457_v40 = vmul.f32 0.5, %v456_v46  ;;  %v409_v53 = vmul.f32 %v706_v26, %v408_v49  ;;  %vm450_vm12 = vweird.f32 %v1147_v50  ;;  %vm440_vm13 = vweird.f32 %v1156_v56 }
  0xbf   : > { %v423_v55 = vsel %vm422_vm3, %v704_v16, %v419_v51  ;;  %vm337_vm15 = vcmp.gt.f32.partialorder %v1156_v56, 0.0  ;;  %vm342_vm1 = vcmp.gt.f32.partialorder %v1160_v61, 0.0  ;;  %vm490_vm2 = vweird.f32 %v1160_v61 }
  0xc0   : > { %v458_v54 = vsub.f32 1.5, %v457_v40  ;;  %v511_v58 = vsel %vm335_vm6, %v423_v55, 0.0  ;;  %v413_v59 = vsel %vm412_vm7, %v706_v26, %v409_v53  ;;  %v1166_v52 = vld [vmem:[%s899_s15 + $0x68] sm:$0xff]  ;;  %v710_v0 = vpop.eup %709 }
  0xc1   : > { %527 = vst.msk [vmem:[%s899_s15 + $0x38] sm:$0xff] %vm163_vm0, %v511_v58  ;;  %v510_v62 = vsel %vm334_vm8, %v413_v59, 0.0  ;;  %v1173_v57 = vld [vmem:[%s899_s15 + $0x60] sm:$0xff]  ;;  %715 = vrsqrt.f32 %v1166_v52  ;;  %v445_v2 = vmul.f32 %v710_v0, %v1147_v50  ;;  %v712_v5 = vpop.eup %711  ;;  %vm451_vm14 = vweird.f32 %v710_v0 }
  0xc2   : > { %v459_v60 = vmul.f32 %v708_v35, %v458_v54  ;;  %526 = vst.msk [vmem:[%s899_s15 + $0x30] sm:$0xff] %vm163_vm0, %v510_v62  ;;  %717 = vrsqrt.f32 %v1173_v57  ;;  %v435_v8 = vmul.f32 %v712_v5, %v1156_v56  ;;  %vm452_vm3 = vmor %vm450_vm12, %vm451_vm14  ;;  %vm441_vm4 = vweird.f32 %v712_v5 }
  0xc3   : > { %v446_v4 = vmul.f32 %v710_v0, %v445_v2  ;;  %v714_v6 = vpop.eup %713  ;;  %vm480_vm5 = vweird.f32 %v1166_v52  ;;  %vm442_vm8 = vmor %vm440_vm13, %vm441_vm4  ;;  %vm470_vm14 = vweird.f32 %v1173_v57 }
  0xc4   : > { %v463_v63 = vsel %vm462_vm9, %v708_v35, %v459_v60  ;;  %v1181_v3 = vld [vmem:[%s899_s15 + $0x78] sm:$0xff]  ;;  %v485_v10 = vmul.f32 %v714_v6, %v1160_v61  ;;  %v436_v13 = vmul.f32 %v712_v5, %v435_v8  ;;  %vm491_vm6 = vweird.f32 %v714_v6 }
  0xc5   : > { %v515_v1 = vsel %vm339_vm10, %v463_v63, 0.0  ;;  %719 = vrsqrt.f32 %v1181_v3  ;;  %v447_v7 = vmul.f32 0.5, %v446_v4  ;;  %vm341_vm9 = vcmp.gt.f32.partialorder %v1166_v52, 0.0 }
  0xc6   : > { %531 = vst.msk [vmem:[%s899_s15 + $0x58] sm:$0xff] %vm163_vm0, %v515_v1  ;;  %v486_v17 = vmul.f32 %v714_v6, %v485_v10  ;;  %v437_v16 = vmul.f32 0.5, %v436_v13 }
  0xc7   : > { %v716_v9 = vpop.eup %715  ;;  %v448_v12 = vsub.f32 1.5, %v447_v7 }
  0xc8   : > { %v718_v11 = vpop.eup %717  ;;  %v475_v14 = vmul.f32 %v716_v9, %v1166_v52  ;;  %v487_v23 = vmul.f32 0.5, %v486_v17  ;;  %v438_v27 = vsub.f32 1.5, %v437_v16  ;;  %vm481_vm7 = vweird.f32 %v716_v9 }
  0xc9   : > { %v465_v18 = vmul.f32 %v718_v11, %v1173_v57  ;;  %v449_v19 = vmul.f32 %v710_v0, %v448_v12  ;;  %vm471_vm10 = vweird.f32 %v718_v11  ;;  %vm482_vm13 = vmor %vm480_vm5, %vm481_vm7 }
  0xca   : > { %v476_v20 = vmul.f32 %v716_v9, %v475_v14  ;;  %v488_v31 = vsub.f32 1.5, %v487_v23  ;;  %v439_v33 = vmul.f32 %v712_v5, %v438_v27 }
  0xcb   : > { %v720_v15 = vpop.eup %719  ;;  %v466_v25 = vmul.f32 %v718_v11, %v465_v18  ;;  %v453_v26 = vsel %vm452_vm3, %v710_v0, %v449_v19  ;;  %vm340_vm3 = vcmp.gt.f32.partialorder %v1173_v57, 0.0 }
  0xcc   : > { %v495_v22 = vmul.f32 %v720_v15, %v1181_v3  ;;  %v477_v28 = vmul.f32 0.5, %v476_v20  ;;  %v514_v30 = vsel %vm338_vm11, %v453_v26, 0.0  ;;  %v489_v35 = vmul.f32 %v714_v6, %v488_v31  ;;  %vm492_vm11 = vmor %vm490_vm2, %vm491_vm6 }
  0xcd   : > { %v467_v32 = vmul.f32 0.5, %v466_v25  ;;  %530 = vst.msk [vmem:[%s899_s15 + $0x50] sm:$0xff] %vm163_vm0, %v514_v30  ;;  %v443_v37 = vsel %vm442_vm8, %v712_v5, %v439_v33  ;;  %vm501_vm12 = vweird.f32 %v720_v15  ;;  %vm472_vm2 = vmor %vm470_vm14, %vm471_vm10 }
  0xce   : > { %v496_v29 = vmul.f32 %v720_v15, %v495_v22  ;;  %v478_v34 = vsub.f32 1.5, %v477_v28  ;;  %v513_v41 = vsel %vm337_vm15, %v443_v37, 0.0  ;;  %v493_v24 = vsel %vm492_vm11, %v714_v6, %v489_v35 }
  0xcf   : > { %v468_v36 = vsub.f32 1.5, %v467_v32  ;;  %529 = vst.msk [vmem:[%s899_s15 + $0x48] sm:$0xff] %vm163_vm0, %v513_v41  ;;  %v518_v43 = vsel %vm342_vm1, %v493_v24, 0.0  ;;  %vm500_vm15 = vweird.f32 %v1181_v3  ;;  %vm343_vm1 = vcmp.gt.f32.partialorder %v1181_v3, 0.0 }
  0xd0   : > { %v497_v21 = vmul.f32 0.5, %v496_v29  ;;  %v479_v38 = vmul.f32 %v716_v9, %v478_v34  ;;  %534 = vst.msk [vmem:[%s899_s15 + $0x70] sm:$0xff] %vm163_vm0, %v518_v43  ;;  %vm502_vm4 = vmor %vm500_vm15, %vm501_vm12 }
  0xd1   : > { %v469_v42 = vmul.f32 %v718_v11, %v468_v36 }
  0xd2   : > { %v498_v39 = vsub.f32 1.5, %v497_v21  ;;  %v483_v44 = vsel %vm482_vm13, %v716_v9, %v479_v38 }
  0xd3   : > { %v517_v46 = vsel %vm341_vm9, %v483_v44, 0.0  ;;  %v473_v47 = vsel %vm472_vm2, %v718_v11, %v469_v42 }
  0xd4   : > { %v499_v45 = vmul.f32 %v720_v15, %v498_v39  ;;  %533 = vst.msk [vmem:[%s899_s15 + $0x68] sm:$0xff] %vm163_vm0, %v517_v46  ;;  %v516_v48 = vsel %vm340_vm3, %v473_v47, 0.0 }
  0xd5   : > { %532 = vst.msk [vmem:[%s899_s15 + $0x60] sm:$0xff] %vm163_vm0, %v516_v48 }
  0xd6   : > { %v503_v49 = vsel %vm502_vm4, %v720_v15, %v499_v45 }
  0xd7   : > { %v519_v40 = vsel %vm343_vm1, %v503_v49, 0.0 }
  0xd8   : > { %535 = vst.msk [vmem:[%s899_s15 + $0x78] sm:$0xff] %vm163_vm0, %v519_v40 }
  0xd9 PF: > { %s14_s11 = sadd.s32 1, %s801_s11   ;;  %s1255_s6 = smov %s785_s7 }
  0xda   : > { %p11_p0 = scmp.ge.s32.totalorder %s14_s11, 4   ;;  %s1256_s7 = smov %s789_s8 }
  0xdb   : > { %s1257_s8 = smov %s865_s18  ;;  %s1258_s9 = smov %s797_s10 }
  0xdc   : > { %s1259_s10 = smov %s1261_s13  ;;  %13 = sbr.rel (!%p11_p0) target bundleno = 4 (0x4), region = 72 }
  0xe1   :  { %558 = vsyncpa [#allocation3], 1 }
  0xe2   :  { %560 = vsyncpa [#allocation3 + $0x1], 1 }

</bundles_post_ra>
